<compile_context>
chip_gen: v7x
topology: tpu7x:2x2x1
jax: 0.10.0
libtpu: 0.0.40
codegen_flags: <defaults>
</compile_context>

<pallas_src>
import functools

import jax
import jax.numpy as jnp
from jax import lax
from jax.experimental import pallas as pl
from jax.experimental.pallas import tpu as pltpu


def _round_up(x, m):
    return ((x + m - 1) // m) * m


def _vmem_limit(required_bytes):
    """Scoped-VMEM budget: required (plus headroom), capped below physical."""
    try:
        info = pltpu.get_tpu_info()
        physical = int(getattr(info, "vmem_capacity_bytes", 64 * 1024 * 1024))
    except Exception:  # pragma: no cover - fallback if query unavailable
        physical = 64 * 1024 * 1024          # v7x is the smallest (64 MiB)
    cap = max(physical - 16 * 1024 * 1024, 16 * 1024 * 1024)  # Mosaic headroom
    want = max(int(1.5 * required_bytes), 16 * 1024 * 1024)
    return int(min(want, cap))


# ----------------------------------------------------------------------------
# 1) Bottleneck projection kernel
# ----------------------------------------------------------------------------
def _bottleneck_kernel(x_ref, w_ref, b_ref, mean_ref, logvar_ref):
    # x_ref:      (TM, d)   activation row tile
    # w_ref:      (2d, d)   nn.Linear weight, resident across the grid
    # b_ref:      (2, d)    row 0 = mean bias, row 1 = log-variance bias
    # mean_ref:   (TM, d)   output chunk 0, written directly from the MXU
    # logvar_ref: (TM, d)   output chunk 1, written directly from the MXU
    d = mean_ref.shape[-1]
    x = x_ref[...]
    # Sublane (row) slices of the resident weight are tile-aligned; this avoids
    # a (TM, 2d) intermediate sliced at a non-128-aligned column.
    w_mean = w_ref[0:d, :]
    w_logv = w_ref[d:2 * d, :]
    mean = jnp.einsum("md,nd->mn", x, w_mean,
                      preferred_element_type=jnp.float32)   # x @ W_mean^T
    logv = jnp.einsum("md,nd->mn", x, w_logv,
                      preferred_element_type=jnp.float32)   # x @ W_logv^T
    mean_ref[...] = (mean + b_ref[0:1, :]).astype(mean_ref.dtype)
    logvar_ref[...] = (logv + b_ref[1:2, :]).astype(logvar_ref.dtype)


def bottleneck_forward(H, weight, bias, *, tm=None):
    """Pallas equivalent of Bottleneck.forward.

    Args:
        H:      (batch, seq, dim)
        weight: (2*dim, dim)  -- torch nn.Linear.weight convention
        bias:   (2*dim,)      -- torch nn.Linear.bias
    Returns:
        (means, log_covariances), each (batch, seq, dim)
    """
    b, s, d = H.shape
    assert weight.shape == (2 * d, d) and bias.shape == (2 * d,)
    m = b * s
    x2d = H.reshape(m, d)                 # no pad: ragged last block is clipped
    b2d = bias.reshape(2, d)

    x_item = jnp.dtype(H.dtype).itemsize
    w_item = jnp.dtype(weight.dtype).itemsize
    if tm is None:
        # ~2 MiB of activations per grid step; clamp to [512, 4096] rows.
        tm = (2 * 1024 * 1024) // max(d * x_item, 1)
        tm = max(512, min(tm, 4096))
    tm = min(_round_up(tm, 8), _round_up(m, 8))

    grid = (pl.cdiv(m, tm),)

    # Double-buffered x tile + two double-buffered output tiles + resident
    # weight/bias (counted twice, conservatively).
    required = (2 * tm * d) * x_item + (2 * 2 * tm * d) * x_item \
        + 2 * (2 * d * d + 2 * d) * w_item
    vmem_limit = _vmem_limit(required)

    # TODO(synk): for very large probe dims on v5e, cast the weight to bf16 or
    # add a K grid axis with an f32 VMEM accumulator; probe dims are small
    # enough here to keep the weight resident.
    means2d, logvar2d = pl.pallas_call(
        _bottleneck_kernel,
        out_shape=(
            jax.ShapeDtypeStruct((m, d), H.dtype),
            jax.ShapeDtypeStruct((m, d), H.dtype),
        ),
        grid=grid,
        in_specs=[
            pl.BlockSpec((tm, d), lambda i: (i, 0)),        # activations: tiled
            pl.BlockSpec((2 * d, d), lambda i: (0, 0)),     # weight: resident
            pl.BlockSpec((2, d), lambda i: (0, 0)),         # bias: resident
        ],
        out_specs=(
            pl.BlockSpec((tm, d), lambda i: (i, 0)),
            pl.BlockSpec((tm, d), lambda i: (i, 0)),
        ),
        compiler_params=pltpu.CompilerParams(
            dimension_semantics=("parallel",),              # rows independent
            vmem_limit_bytes=vmem_limit,
        ),
    )(x2d, weight, b2d)

    return means2d.reshape(b, s, d), logvar2d.reshape(b, s, d)


# ----------------------------------------------------------------------------
# 2) IBLoss.forward: masked token NLL (Pallas) + beta * kld
# ----------------------------------------------------------------------------
def _masked_nll_kernel(p_ref, lab_ref, acc_ref, *, total_rows, tm, steps):
    # p_ref:   (TM, C)  softmaxed POS probabilities (native dtype)
    # lab_ref: (TM, 1)  int32 gold label ids; -1 marks padded (invalid) tokens
    # acc_ref: (TM, 1)  f32 resident accumulator for this parallel slice
    i = pl.program_id(0)            # parallel slice (megacore on v7x)
    j = pl.program_id(1)            # serial reduction step within the slice

    @pl.when(j == 0)
    def _():
        acc_ref[...] = jnp.zeros_like(acc_ref)

    lab = lab_ref[...]
    p = p_ref[...].astype(jnp.float32)                       # per-tile upcast
    classes = lax.broadcasted_iota(jnp.int32, p.shape, 1)    # (TM, C)
    picked = jnp.sum(jnp.where(classes == lab, p, 0.0),
                     axis=-1, keepdims=True)                 # (TM, 1)
    # TODO(synk): the 1e-20 clamp makes -log(0) ~46 instead of inf (torch
    # NLLLoss on log-softmax would give inf); assumed acceptable.
    nll = -jnp.log(jnp.maximum(picked, 1e-20))

    # Mask ragged / overshoot blocks by global row index; padded tokens by
    # lab < 0 (so undefined edge-row reads can never poison the accumulator).
    row = (i * steps + j) * tm + lax.broadcasted_iota(jnp.int32, (tm, 1), 0)
    valid = jnp.logical_and(row < total_rows, lab >= 0).astype(jnp.float32)
    acc_ref[...] += valid * nll


def pos_probe_xent(prediction_batch, label_batch, length_batch, *, tm=None,
                   num_parallel=2):
    """Masked cross-entropy over softmaxed predictions (POSProbeLoss).

    Returns (batch_xent_loss, number_of_sentences).
    """
    # TODO(synk): pos_probe.POSProbeLoss source is not in the provided spec;
    # this assumes: mean over non-padded tokens (token index < sentence length)
    # of -log p[gold], and number_of_sentences = count of nonzero lengths.
    bsz, seq, n_cls = prediction_batch.shape
    m = bsz * seq
    p2d = prediction_batch.reshape(m, n_cls)     # native dtype, no pad/astype
    # Fold validity into the labels: -1 => padded token (masked in-kernel).
    valid = (jnp.arange(seq, dtype=jnp.int32)[None, :]
             < length_batch.astype(jnp.int32)[:, None])
    lab2d = jnp.where(valid, label_batch.astype(jnp.int32), -1).reshape(m, 1)

    p_item = jnp.dtype(prediction_batch.dtype).itemsize
    if tm is None:
        # ~2 MiB of probabilities per grid step; clamp to [512, 16384] rows.
        tm = (2 * 1024 * 1024) // max(n_cls * p_item, 1)
        tm = max(512, min(tm, 16384))
    tm = min(_round_up(tm, 8), _round_up(m, 8))

    nblocks = pl.cdiv(m, tm)
    n_par = num_parallel if nblocks >= num_parallel else 1
    steps = pl.cdiv(nblocks, n_par)

    def blk_map(i, j):
        # Clamp overshoot blocks (n_par*steps may exceed nblocks); the kernel's
        # global-row mask zeroes their contribution.
        return (jnp.minimum(i * steps + j, nblocks - 1), 0)

    required = (2 * tm * n_cls) * p_item + 2 * tm * 4 + n_par * tm * 4
    vmem_limit = _vmem_limit(required)

    kernel = functools.partial(_masked_nll_kernel, total_rows=m, tm=tm,
                               steps=steps)
    partial_acc = pl.pallas_call(
        kernel,
        out_shape=jax.ShapeDtypeStruct((n_par * tm, 1), jnp.float32),
        grid=(n_par, steps),
        in_specs=[
            pl.BlockSpec((tm, n_cls), blk_map),
            pl.BlockSpec((tm, 1), blk_map),
        ],
        # One resident (tm, 1) accumulator per parallel slice.
        out_specs=pl.BlockSpec((tm, 1), lambda i, j: (i, 0)),
        compiler_params=pltpu.CompilerParams(
            dimension_semantics=("parallel", "arbitrary"),
            vmem_limit_bytes=vmem_limit,
        ),
    )(p2d, lab2d)

    total_nll = jnp.sum(partial_acc)              # tiny final reduce in XLA
    n_tokens = jnp.maximum(jnp.sum(valid), 1).astype(jnp.float32)
    number_of_sentences = jnp.sum(length_batch != 0).astype(jnp.float32)
    return total_nll / n_tokens, number_of_sentences


def ib_loss_forward(prediction_batch, label_batch, length_batch, kld, beta):
    """IBLoss.forward: (xent + beta * kld, number_of_sentences)."""
    batch_xent_loss, number_of_sentences = pos_probe_xent(
        prediction_batch, label_batch, length_batch)
    batch_ib_loss = batch_xent_loss + beta * kld
    return batch_ib_loss, number_of_sentences


# ----------------------------------------------------------------------------
if __name__ == "__main__":
    batch, seq, dim, n_pos = 2, 8, 32, 32
    beta = 1e-3

    key = jax.random.PRNGKey(0)
    k_h, k_w, k_b, k_p, k_l, k_kld = jax.random.split(key, 6)

    # --- Bottleneck projection ---
    H = jax.random.normal(k_h, (batch, seq, dim), dtype=jnp.float32)
    weight = jax.random.normal(k_w, (2 * dim, dim), dtype=jnp.float32) * 0.02
    bias = jax.random.normal(k_b, (2 * dim,), dtype=jnp.float32) * 0.02

    means, log_covs = bottleneck_forward(H, weight, bias)
    jax.block_until_ready((means, log_covs))

    y_ref = jnp.einsum("bsd,ed->bse", H, weight) + bias
    means_ref, log_covs_ref = jnp.split(y_ref, 2, axis=-1)
    assert means.shape == (batch, seq, dim)
    assert log_covs.shape == (batch, seq, dim)
    assert jnp.allclose(means, means_ref, atol=1e-5)
    assert jnp.allclose(log_covs, log_covs_ref, atol=1e-5)

    # --- IBLoss.forward ---
    logits = jax.random.normal(k_p, (batch, seq, n_pos), dtype=jnp.float32)
    predictions = jax.nn.softmax(logits, axis=-1)   # "softmaxed POS predictions"
    labels = jax.random.randint(k_l, (batch, seq), 0, n_pos, dtype=jnp.int32)
    lengths = jnp.array([seq, seq - 3], dtype=jnp.int32)  # one full, one padded
    kld = jax.random.uniform(k_kld, (), dtype=jnp.float32)

    ib_loss, n_sent = ib_loss_forward(predictions, labels, lengths, kld, beta)
    jax.block_until_ready((ib_loss, n_sent))

    # Pure-JAX reference for the same (assumed) POSProbeLoss formulation.
    tok_nll = -jnp.take_along_axis(
        jnp.log(predictions), labels[..., None], axis=-1)[..., 0]
    valid_ref = jnp.arange(seq)[None, :] < lengths[:, None]
    xent_ref = jnp.where(valid_ref, tok_nll, 0.0).sum() / valid_ref.sum()
    ib_ref = xent_ref + beta * kld
    assert jnp.allclose(ib_loss, ib_ref, atol=1e-5)
    assert int(n_sent) == 2

    print("KERNEL_OK")
</pallas_src>

<mosaic_0001>
module attributes {stable_mosaic.version = 11 : i64} {
  func.func @_bottleneck_kernel(%arg0: i32, %arg1: memref<16x32xf32, #tpu.memory_space<vmem>>, %arg2: memref<64x32xf32, #tpu.memory_space<vmem>>, %arg3: memref<2x32xf32, #tpu.memory_space<vmem>>, %arg4: memref<16x32xf32, #tpu.memory_space<vmem>>, %arg5: memref<16x32xf32, #tpu.memory_space<vmem>>) attributes {dimension_semantics = [#tpu.dimension_semantics<parallel>], iteration_bounds = array<i64: 1>, scalar_prefetch = 0 : i64, scratch_operands = 0 : i64, tpu.core_type = #tpu.core_type<tc>, window_params = [{transform_indices = @transform_0, window_bounds = array<i64: 16, 32>}, {pipeline_mode = #tpu.pipeline_mode<synchronous>, transform_indices = @transform_1, window_bounds = array<i64: 64, 32>}, {pipeline_mode = #tpu.pipeline_mode<synchronous>, transform_indices = @transform_2, window_bounds = array<i64: 2, 32>}, {transform_indices = @transform_3, window_bounds = array<i64: 16, 32>}, {transform_indices = @transform_4, window_bounds = array<i64: 16, 32>}]} {
    %c0 = arith.constant 0 : index
    %c0_0 = arith.constant 0 : index
    %0 = vector.load %arg1[%c0, %c0_0] : memref<16x32xf32, #tpu.memory_space<vmem>>, vector<16x32xf32>
    %c0_1 = arith.constant 0 : index
    %c0_2 = arith.constant 0 : index
    %1 = vector.load %arg2[%c0_1, %c0_2] : memref<64x32xf32, #tpu.memory_space<vmem>>, vector<32x32xf32>
    %c32 = arith.constant 32 : index
    %c0_3 = arith.constant 0 : index
    %2 = vector.load %arg2[%c32, %c0_3] : memref<64x32xf32, #tpu.memory_space<vmem>>, vector<32x32xf32>
    "tpu.trace_start"() <{level = 10 : i32, message = "md,nd->mn"}> : () -> ()
    %cst = arith.constant dense<0.000000e+00> : vector<16x32xf32>
    %3 = tpu.matmul %0, %1, %cst {dimension_numbers = #tpu.dot_dimension_numbers<[1], [1], [0], [0], [0, 0, 1, 0], [], []>} : vector<16x32xf32>, vector<32x32xf32>, vector<16x32xf32> -> vector<16x32xf32>
    %cst_4 = arith.constant dense<0.000000e+00> : vector<16x32xf32>
    %4 = tpu.matmul %0, %2, %cst_4 {dimension_numbers = #tpu.dot_dimension_numbers<[1], [1], [0], [0], [0, 0, 1, 0], [], []>} : vector<16x32xf32>, vector<32x32xf32>, vector<16x32xf32> -> vector<16x32xf32>
    "tpu.trace_stop"() : () -> ()
    %c0_5 = arith.constant 0 : index
    %c0_6 = arith.constant 0 : index
    %5 = vector.load %arg3[%c0_5, %c0_6] : memref<2x32xf32, #tpu.memory_space<vmem>>, vector<1x32xf32>
    %6 = vector.broadcast %5 : vector<1x32xf32> to vector<16x32xf32>
    %7 = arith.addf %3, %6 : vector<16x32xf32>
    %c0_7 = arith.constant 0 : index
    %c0_8 = arith.constant 0 : index
    %8 = vector.load %arg4[%c0_7, %c0_8] : memref<16x32xf32, #tpu.memory_space<vmem>>, vector<16x32xf32>
    tpu.vector_store %arg4[%c0_7, %c0_8], %7 {strides = array<i32>} : memref<16x32xf32, #tpu.memory_space<vmem>>, vector<16x32xf32>,
    %c1 = arith.constant 1 : index
    %c0_9 = arith.constant 0 : index
    %9 = vector.load %arg3[%c1, %c0_9] : memref<2x32xf32, #tpu.memory_space<vmem>>, vector<1x32xf32>
    %10 = vector.broadcast %9 : vector<1x32xf32> to vector<16x32xf32>
    %11 = arith.addf %4, %10 : vector<16x32xf32>
    %c0_10 = arith.constant 0 : index
    %c0_11 = arith.constant 0 : index
    %12 = vector.load %arg5[%c0_10, %c0_11] : memref<16x32xf32, #tpu.memory_space<vmem>>, vector<16x32xf32>
    tpu.vector_store %arg5[%c0_10, %c0_11], %11 {strides = array<i32>} : memref<16x32xf32, #tpu.memory_space<vmem>>, vector<16x32xf32>,
    return
  }
  func.func @transform_0(%arg0: i32) -> (i32, i32) {
    %c0_i32 = arith.constant 0 : i32
    %c0_i32_0 = arith.constant 0 : i32
    return %arg0, %c0_i32 : i32, i32
  }
  func.func @transform_1(%arg0: i32) -> (i32, i32) {
    %c0_i32 = arith.constant 0 : i32
    %c0_i32_0 = arith.constant 0 : i32
    %c0_i32_1 = arith.constant 0 : i32
    return %c0_i32, %c0_i32_0 : i32, i32
  }
  func.func @transform_2(%arg0: i32) -> (i32, i32) {
    %c0_i32 = arith.constant 0 : i32
    %c0_i32_0 = arith.constant 0 : i32
    %c0_i32_1 = arith.constant 0 : i32
    return %c0_i32, %c0_i32_0 : i32, i32
  }
  func.func @transform_3(%arg0: i32) -> (i32, i32) {
    %c0_i32 = arith.constant 0 : i32
    %c0_i32_0 = arith.constant 0 : i32
    return %arg0, %c0_i32 : i32, i32
  }
  func.func @transform_4(%arg0: i32) -> (i32, i32) {
    %c0_i32 = arith.constant 0 : i32
    %c0_i32_0 = arith.constant 0 : i32
    return %arg0, %c0_i32 : i32, i32
  }
}

</mosaic_0001>

<bundles_post_ra>
// kernel: tpu_custom_call.1
= control target key start
LH: loop header
LB: loop body
LE: loop exit
PB: predicated region body
PF: predicated region fallthrough
CT: control target
= control target key end

     0   :  { %10 = vsyncpa [#allocation3], 0  ;;  %vm33_vm0 = vcmask 261120   ;;  %s505_s0 = inlined_call_operand.vmem [shape: f32[16,32], index: 0, kind: input, shape index: {}]   ;;  %s506_s1 = inlined_call_operand.vmem [shape: f32[64,32], index: 1, kind: input, shape index: {}]   ;;  %s507_s2 = inlined_call_operand.vmem [shape: f32[2,32], index: 2, kind: input, shape index: {}]   ;;  %s508_s3 = inlined_call_operand.hbm [shape: f32[16,32], index: 3, kind: output, shape index: {0}]   ;;  %s509_s4 = inlined_call_operand.hbm [shape: f32[16,32], index: 4, kind: output, shape index: {1}]  }
   0x1   :  { %v20_v0 = vld [vmem:[%s506_s1] sm:$0xff]  ;;  %v21_v1 = vld [vmem:[%s506_s1 + $0x8] sm:$0xff]  ;;  %vm419_vm1 = vmpackc.low %vm33_vm0, %vm33_vm0 }
   0x2   :  { %v24_v2 = vld [vmem:[%s506_s1 + $0x20] sm:$0xff]  ;;  %v303_v3 = vpack.c.bf16 %v21_v1, %v20_v0  ;;  %v25_v5 = vld [vmem:[%s506_s1 + $0x28] sm:$0xff]  ;;  %v22_v6 = vld [vmem:[%s506_s1 + $0x10] sm:$0xff] }
   0x3   :  { %v315_v7 = vpack.c.bf16 %v25_v5, %v24_v2  ;;  %v23_v8 = vld [vmem:[%s506_s1 + $0x18] sm:$0xff]  ;;  %v26_v9 = vld [vmem:[%s506_s1 + $0x30] sm:$0xff]  ;;  %v18_v13 = vld [vmem:[%s505_s0] sm:$0xff] }
   0x4   :  { %v27_v10 = vld [vmem:[%s506_s1 + $0x38] sm:$0xff]  ;;  %305 = vmatprep.subr.msk.bf16.mxu0 %vm419_vm1, %v303_v3  ;;  %v309_v11 = vpack.c.bf16 %v23_v8, %v22_v6 }
   0x5   :  { %v321_v12 = vpack.c.bf16 %v27_v10, %v26_v9 }
   0x6   :  { %11 = vsyncpa [#allocation5], 0  ;;  %317 = vmatprep.subr.msk.bf16.mxu1 %vm419_vm1, %v315_v7  ;;  %308 = vmatpush3.bf16.xpose.msk.msra.mxu0 %vm419_vm1, %v303_v3  ;;  %v19_v14 = vld [vmem:[%s505_s0 + $0x8] sm:$0xff]  ;;  %v255_v15 = vld [vmem:[%s507_s2] ss:$0 sm:$0xff]  ;;  %s379_s10 = smov [#allocation2]  }
   0x7   :  { %320 = vmatpush3.bf16.xpose.msk.msra.mxu1 %vm419_vm1, %v315_v7  ;;  %311 = vmatprep.subr.msk.bf16.mxu0 %vm419_vm1, %v309_v11  ;;  %s228_s11 = sshll.u32 %s379_s10, 4  ;;  %v262_v16 = vld [vmem:[%s507_s2 + $0x1] ss:$0 sm:$0xff]  ;;  %s380_s14 = smov [#allocation4]   ;;  %s229_s11 = int_to_ptr.vmem [resolvable:$true] %s228_s11 }
   0x8   :  { %323 = vmatprep.subr.msk.bf16.mxu1 %vm419_vm1, %v321_v12  ;;  %289 = vmatprep.mubr.msk.f32.mxu0 %vm33_vm0, %v18_v13  ;;  %s240_s15 = sshll.u32 %s380_s14, 4  ;;  %s331_s0 = scalar_lea.vmem %s229_s11, 256  ;;  %s471_s15 = int_to_ptr.vmem [resolvable:$true] %s240_s15 }
   0x9   :  { %300 = vmatprep.mubr.msk.f32.mxu1 %vm33_vm0, %v18_v13  ;;  %p332_p0 = scmp.ne.s32.totalorder %s229_s11, %s331_s0  ;;  %p336_p1 = scmp.lt.s32.totalorder %s229_s11, %s229_s11 }
   0xa   :  { %p337_p2 = scmp.lt.s32.totalorder %s331_s0, %s331_s0 }
   0xc   :  { %p338_p3 = por %p337_p2, %p336_p1 }
   0xe   :  { %314 = vmatpush3.bf16.xpose.msk.msra.mxu0 %vm419_vm1, %v309_v11  ;;  %p339_p4 = pnand %p338_p3, %p332_p0 }
   0xf   :  { %326 = vmatpush3.bf16.xpose.msk.msra.mxu1 %vm419_vm1, %v321_v12 }
  0x15   :  { %290 = vmatmul.mubr.msk.f32.vlgmr.msra.gmra.mrb[0].mxu0 %vm33_vm0, %v19_v14 }
  0x16   :  { %301 = vmatmul.mubr.msk.f32.vlgmr.msra.gmra.mrb[0].mxu1 %vm33_vm0, %v19_v14 }
  0xe8   :  { %v291_v17 = vpop.f32.mrb[0].mxu0 }
  0xe9   :  { %v124_v18 = vadd.f32 %v291_v17, %v255_v15  ;;  %v302_v19 = vpop.f32.mrb[0].mxu1  ;;  %v118_v20 = vpop.f32.mrb[1].mxu0 }
  0xea   :  { %v218_v21 = vadd.f32 %v302_v19, %v262_v16  ;;  %v119_v22 = vadd.f32 %v255_v15, %v118_v20  ;;  %v212_v23 = vpop.f32.mrb[1].mxu1 }
  0xeb   :  { %128 = vst.msk [vmem:[#allocation2 + $0x8] sm:$0xff] %vm33_vm0, %v124_v18  ;;  %v213_v24 = vadd.f32 %v262_v16, %v212_v23 }
  0xec   :  { %222 = vst.msk [vmem:[#allocation4 + $0x8] sm:$0xff] %vm33_vm0, %v218_v21  ;;  %127 = vst.msk [vmem:[#allocation2] sm:$0xff] %vm33_vm0, %v119_v22 }
  0xed   :  { %221 = vst.msk [vmem:[#allocation4] sm:$0xff] %vm33_vm0, %v213_v24 }
  0xee   :  { %342 = shalt.err (!%p339_p4)
}
  0xef   :  { %s343_s17 = scalar_lea.hbm %s508_s3, 256 }
  0xf0   :  { %p344_p5 = scmp.ne.s32.totalorder %s508_s3, %s343_s17  ;;  %p347_p6 = scmp.lt.u32.totalorder %s343_s17, %s508_s3 }
  0xf2   :  { %p349_p7 = pnand %p347_p6, %p344_p5 }
  0xf4   :  { %352 = shalt.err (!%p349_p7)
}
  0xf5   :  { %s381_s22 = smov 128   ;;  %s382_s23 = smov 8  }
  0xf6   :  { %234 = dma.vmem_to_hbm [thread:$0]  %s229_s11, 256, %s508_s3, [#allocation3], %s381_s22, %s381_s22, %s382_s23  }
  0xf7   :  { %s353_s26 = scalar_lea.vmem %s471_s15, 256  ;;  %p358_p9 = scmp.lt.s32.totalorder %s471_s15, %s471_s15 }
  0xf8   :  { %p354_p8 = scmp.ne.s32.totalorder %s471_s15, %s353_s26  ;;  %p359_p10 = scmp.lt.s32.totalorder %s353_s26, %s353_s26 }
  0xfa   :  { %p360_p11 = por %p359_p10, %p358_p9 }
  0xfc   :  { %p361_p12 = pnand %p360_p11, %p354_p8 }
  0xfe   :  { %364 = shalt.err (!%p361_p12)
}
  0xff   :  { %s365_s29 = scalar_lea.hbm %s509_s4, 256 }
 0x100   :  { %p366_p13 = scmp.ne.s32.totalorder %s509_s4, %s365_s29  ;;  %p369_p0 = scmp.lt.u32.totalorder %s365_s29, %s509_s4 }
 0x102   :  { %p371_p1 = pnand %p369_p0, %p366_p13 }
 0x104   :  { %374 = shalt.err (!%p371_p1)
}
 0x105   :  { %246 = dma.vmem_to_hbm [thread:$0]  %s471_s15, 256, %s509_s4, [#allocation5], %s381_s22, %s381_s22, %s382_s23  }
 0x106   :  { %375 = dma.done.wait [#allocation3], 256  }
 0x107   :  { %376 = vsyncadd [#allocation3], 4294967040 }
 0x108   :  { %377 = dma.done.wait [#allocation5], 256  }
 0x109   :  { %378 = vsyncadd [#allocation5], 4294967040 }
 0x10a   :  { %253 = vsyncpa [#allocation3], 1 }
 0x10b   :  { %254 = vsyncpa [#allocation5], 1 }

</bundles_post_ra>
